<compile_context>
chip_gen: v6e
topology: v6e:2x2x1
jax: 0.10.0
libtpu: 0.0.40
codegen_flags: <defaults>
</compile_context>

<pallas_src>
import jax
import jax.numpy as jnp
from jax.experimental import pallas as pl
from jax.experimental.pallas import tpu as pltpu


def cbam_kernel(x_ref, w1t_ref, w32_ref, o_ref):
    # x_ref: (Bt, C, HW)   w1t: (C, Cr)   w32: (1, Cr)
    bt = x_ref.shape[0]
    hw = x_ref.shape[-1]

    xf = x_ref[...].astype(jnp.float32)                    # (Bt, C, HW)

    # Channel pooling: single sweep of x for sum and max; mean = sum * (1/HW).
    avg = jnp.sum(xf, axis=-1) * (1.0 / hw)                # (Bt, C)
    mx = jnp.max(xf, axis=-1)                              # (Bt, C)

    # Shared fc1 for both branches in ONE matmul: (2*Bt, C) @ (C, Cr).
    pooled = jnp.concatenate([avg, mx], axis=0)            # (2*Bt, C)
    h = jnp.dot(pooled, w1t_ref[...],
                preferred_element_type=jnp.float32)        # (2*Bt, Cr)
    h = jnp.maximum(h, 0.0)                                # ReLU
    h = h[:bt] + h[bt:]                                    # relu(W1 avg)+relu(W1 max), (Bt, Cr)

    # conv1 folded into fc2: s = (w3 @ W2) @ h.  Cr is tiny -> VPU (mul + sum).
    s = jnp.sum(h * w32_ref[...], axis=-1, keepdims=True)  # (Bt, 1)

    # out = sigmoid(conv1(out) * x): per-batch scalar gate broadcast over (C, HW).
    o_ref[...] = jax.nn.sigmoid(s[:, :, None] * xf).astype(o_ref.dtype)


def cbam_forward(x, w1, w2, w3, *, target_block_bytes=2 << 20):
    B, C, H, W = x.shape
    HW = H * W
    x2 = x.reshape(B, C, HW)
    Cr = w1.shape[0]

    # Weight prep (exact algebra, done once in the wrapper):
    w1t = jnp.asarray(w1, jnp.float32).T                                  # (C, Cr)
    w32 = jnp.asarray(w3, jnp.float32) @ jnp.asarray(w2, jnp.float32)     # (1, Cr)

    # Batch-block so each x block is ~target_block_bytes (in+out double-buffered
    # stays well under the 32 MiB default scoped VMEM, incl. v7x).
    per_batch_bytes = C * HW * x.dtype.itemsize
    bt = max(1, min(B, target_block_bytes // max(per_batch_bytes, 1)))
    while B % bt:          # keep the batch grid exact (no padded tail block)
        bt -= 1
    grid = (B // bt,)

    out = pl.pallas_call(
        cbam_kernel,
        out_shape=jax.ShapeDtypeStruct((B, C, HW), x.dtype),
        grid_spec=pltpu.PrefetchScalarGridSpec(
            num_scalar_prefetch=0,
            grid=grid,
            in_specs=[
                pl.BlockSpec((bt, C, HW), lambda b: (b, 0, 0)),
                pl.BlockSpec((C, Cr), lambda b: (0, 0)),
                pl.BlockSpec((1, Cr), lambda b: (0, 0)),
            ],
            out_specs=pl.BlockSpec((bt, C, HW), lambda b: (b, 0, 0)),
        ),
        compiler_params=pltpu.CompilerParams(
            dimension_semantics=("parallel",)),
    )(x2, w1t, w32)
    return out.reshape(B, C, H, W)


def cbam_reference(x, w1, w2, w3):
    # Pure-JAX reference mirroring the PyTorch forward exactly.
    avg = jnp.mean(x, axis=(2, 3))                 # (B, C)
    mx = jnp.max(x, axis=(2, 3))                   # (B, C)

    def mlp(p):
        h = jnp.maximum(p @ w1.T, 0.0)             # (B, Cr)
        return h @ w2.T                            # (B, C)

    out = mlp(avg) + mlp(mx)                       # (B, C)
    s = out @ w3.T                                 # (B, 1)
    s = s[:, :, None, None]                        # (B, 1, 1, 1)
    # Note: module computes sigmoid(conv1(out) * x) (gate inside the sigmoid).
    return jax.nn.sigmoid(s * x)


if __name__ == "__main__":
    B, C, H, W = 2, 64, 16, 16
    reduction = 16
    Cr = C // reduction

    key = jax.random.PRNGKey(0)
    kx, k1, k2, k3 = jax.random.split(key, 4)

    x = jax.random.normal(kx, (B, C, H, W), dtype=jnp.float32)
    # 1x1 conv weights (out, in, 1, 1) squeezed to (out, in); no biases.
    w1 = jax.random.normal(k1, (Cr, C), dtype=jnp.float32) * 0.1
    w2 = jax.random.normal(k2, (C, Cr), dtype=jnp.float32) * 0.1
    w3 = jax.random.normal(k3, (1, C), dtype=jnp.float32) * 0.1

    y = jax.block_until_ready(cbam_forward(x, w1, w2, w3))
    y_ref = cbam_reference(x, w1, w2, w3)

    assert y.shape == (B, C, H, W)
    assert jnp.allclose(y, y_ref, atol=1e-5, rtol=1e-5)
    print("KERNEL_OK")
</pallas_src>

<mosaic_0001>
module attributes {stable_mosaic.version = 11 : i64} {
  func.func @cbam_kernel(%arg0: i32, %arg1: memref<2x64x256xf32, #tpu.memory_space<vmem>>, %arg2: memref<64x4xf32, #tpu.memory_space<vmem>>, %arg3: memref<1x4xf32, #tpu.memory_space<vmem>>, %arg4: memref<2x64x256xf32, #tpu.memory_space<vmem>>) attributes {dimension_semantics = [#tpu.dimension_semantics<parallel>], iteration_bounds = array<i64: 1>, scalar_prefetch = 0 : i64, scratch_operands = 0 : i64, tpu.core_type = #tpu.core_type<tc>, window_params = [{transform_indices = @transform_0, window_bounds = array<i64: 2, 64, 256>}, {pipeline_mode = #tpu.pipeline_mode<synchronous>, transform_indices = @transform_1, window_bounds = array<i64: 64, 4>}, {pipeline_mode = #tpu.pipeline_mode<synchronous>, transform_indices = @transform_2, window_bounds = array<i64: 1, 4>}, {transform_indices = @transform_3, window_bounds = array<i64: 2, 64, 256>}]} {
    %c0 = arith.constant 0 : index
    %c0_0 = arith.constant 0 : index
    %c0_1 = arith.constant 0 : index
    %0 = vector.load %arg1[%c0, %c0_0, %c0_1] : memref<2x64x256xf32, #tpu.memory_space<vmem>>, vector<2x64x256xf32>
    %cst = arith.constant dense<0.000000e+00> : vector<2x64xf32>
    %1 = vector.multi_reduction <add>, %0, %cst [2] : vector<2x64x256xf32> to vector<2x64xf32>
    %cst_2 = arith.constant 3.906250e-03 : f32
    %2 = vector.broadcast %cst_2 : f32 to vector<2x64xf32>
    %3 = arith.mulf %1, %2 : vector<2x64xf32>
    %cst_3 = arith.constant dense<0xFF800000> : vector<2x64xf32>
    %4 = vector.multi_reduction <maximumf>, %0, %cst_3 [2] : vector<2x64x256xf32> to vector<2x64xf32>
    %5 = tpu.concatenate %3, %4 in 0 : vector<2x64xf32>, vector<2x64xf32> -> vector<4x64xf32>
    %c0_4 = arith.constant 0 : index
    %c0_5 = arith.constant 0 : index
    %6 = vector.load %arg2[%c0_4, %c0_5] : memref<64x4xf32, #tpu.memory_space<vmem>>, vector<64x4xf32>
    %cst_6 = arith.constant dense<0.000000e+00> : vector<4x4xf32>
    %7 = tpu.matmul %5, %6, %cst_6 {dimension_numbers = #tpu.dot_dimension_numbers<[1], [0], [0], [1], [0, 0, 1, 1], [], []>} : vector<4x64xf32>, vector<64x4xf32>, vector<4x4xf32> -> vector<4x4xf32>
    %cst_7 = arith.constant 0.000000e+00 : f32
    %8 = vector.broadcast %cst_7 : f32 to vector<4x4xf32>
    %9 = arith.maximumf %7, %8 : vector<4x4xf32>
    %10 = vector.extract_strided_slice %9 {offsets = [0, 0], sizes = [2, 4], strides = [1, 1]} : vector<4x4xf32> to vector<2x4xf32>
    %11 = vector.extract_strided_slice %9 {offsets = [2, 0], sizes = [2, 4], strides = [1, 1]} : vector<4x4xf32> to vector<2x4xf32>
    %12 = arith.addf %10, %11 : vector<2x4xf32>
    %c0_8 = arith.constant 0 : index
    %c0_9 = arith.constant 0 : index
    %13 = vector.load %arg3[%c0_8, %c0_9] : memref<1x4xf32, #tpu.memory_space<vmem>>, vector<1x4xf32>
    %14 = vector.broadcast %13 : vector<1x4xf32> to vector<2x4xf32>
    %15 = arith.mulf %12, %14 : vector<2x4xf32>
    %cst_10 = arith.constant dense<0.000000e+00> : vector<2xf32>
    %16 = vector.multi_reduction <add>, %15, %cst_10 [1] : vector<2x4xf32> to vector<2xf32>
    %17 = vector.shape_cast %16 : vector<2xf32> to vector<2x1xf32>
    %18 = vector.shape_cast %17 : vector<2x1xf32> to vector<2x1x1xf32>
    %19 = vector.broadcast %18 : vector<2x1x1xf32> to vector<2x64x256xf32>
    %20 = arith.mulf %19, %0 : vector<2x64x256xf32>
    %21 = arith.negf %20 : vector<2x64x256xf32>
    %22 = math.exp %21 : vector<2x64x256xf32>
    %cst_11 = arith.constant 1.000000e+00 : f32
    %23 = vector.broadcast %cst_11 : f32 to vector<2x64x256xf32>
    %24 = arith.addf %23, %22 : vector<2x64x256xf32>
    %25 = arith.divf %23, %24 : vector<2x64x256xf32>
    %c0_12 = arith.constant 0 : index
    %c0_13 = arith.constant 0 : index
    %c0_14 = arith.constant 0 : index
    %26 = vector.load %arg4[%c0_12, %c0_13, %c0_14] : memref<2x64x256xf32, #tpu.memory_space<vmem>>, vector<2x64x256xf32>
    tpu.vector_store %arg4[%c0_12, %c0_13, %c0_14], %25 {strides = array<i32>} : memref<2x64x256xf32, #tpu.memory_space<vmem>>, vector<2x64x256xf32>,
    return
  }
  func.func @transform_0(%arg0: i32) -> (i32, i32, i32) {
    %c0_i32 = arith.constant 0 : i32
    %c0_i32_0 = arith.constant 0 : i32
    %c0_i32_1 = arith.constant 0 : i32
    return %arg0, %c0_i32, %c0_i32_0 : i32, i32, i32
  }
  func.func @transform_1(%arg0: i32) -> (i32, i32) {
    %c0_i32 = arith.constant 0 : i32
    %c0_i32_0 = arith.constant 0 : i32
    %c0_i32_1 = arith.constant 0 : i32
    return %c0_i32, %c0_i32_0 : i32, i32
  }
  func.func @transform_2(%arg0: i32) -> (i32, i32) {
    %c0_i32 = arith.constant 0 : i32
    %c0_i32_0 = arith.constant 0 : i32
    %c0_i32_1 = arith.constant 0 : i32
    return %c0_i32, %c0_i32_0 : i32, i32
  }
  func.func @transform_3(%arg0: i32) -> (i32, i32, i32) {
    %c0_i32 = arith.constant 0 : i32
    %c0_i32_0 = arith.constant 0 : i32
    %c0_i32_1 = arith.constant 0 : i32
    return %arg0, %c0_i32, %c0_i32_0 : i32, i32, i32
  }
}

</mosaic_0001>

<bundles_post_ra>
// kernel: tpu_custom_call.1
= control target key start
LH: loop header
LB: loop body
LE: loop exit
PB: predicated region body
PF: predicated region fallthrough
CT: control target
= control target key end

     0   :  { %8 = vsyncpa [#allocation3], 0  ;;  %s1371_s0 = inlined_call_operand.hbm [shape: f32[2,64,256], index: 0, kind: input, shape index: {}]   ;;  %s1372_s1 = inlined_call_operand.vmem [shape: f32[64,4], index: 1, kind: input, shape index: {}]   ;;  %s1373_s2 = inlined_call_operand.vmem [shape: f32[1,4], index: 2, kind: input, shape index: {}]   ;;  %s1374_s3 = inlined_call_operand.hbm [shape: f32[2,64,256], index: 3, kind: output, shape index: {}]  }
   0x1   :  { %9 = vsyncpa [#allocation4], 0  ;;  %s1008_s12 = smov [#allocation2]  }
   0x2   :  { %s15_s13 = sshll.u32 %s1008_s12, 4  ;;  %s16_s13 = int_to_ptr.vmem [resolvable:$true] %s15_s13 }
   0x3   :  { %s972_s14 = scalar_lea.vmem %s16_s13, 4096  ;;  %p977_p1 = scmp.lt.s32.totalorder %s16_s13, %s16_s13 }
   0x4   :  { %p973_p0 = scmp.ne.s32.totalorder %s16_s13, %s972_s14  ;;  %p978_p2 = scmp.lt.s32.totalorder %s972_s14, %s972_s14 }
   0x6   :  { %p979_p3 = por %p978_p2, %p977_p1 }
   0x8   :  { %p980_p4 = pnand %p979_p3, %p973_p0 }
   0xa   :  { %983 = shalt.err (!%p980_p4)
}
   0xb   :  { %s1009_s15 = smov 256   ;;  %s1010_s16 = smov 16  }
   0xc   :  { %21 = dma.hbm_to_vmem [thread:$0]  %s1371_s0, 4096, %s16_s13, [#allocation3], %s1009_s15, %s1009_s15, %s1010_s16  }
   0xd   :  { %1004 = dma.done.wait [#allocation3], 4096  }
   0xe   :  { %1005 = vsyncadd [#allocation3], 4294963200  ;;  %v1040_v0 = vld [vmem:[#allocation2 + $0x80] sm:$0xff]  ;;  %v1042_v1 = vld [vmem:[#allocation2 + $0x88] sm:$0xff]  ;;  %vm1012_vm0 = vmmov 0   ;;  %vm200_vm1 = vcmask 130112  }
   0xf   :  { %v1044_v2 = vld [vmem:[#allocation2] sm:$0xff]  ;;  %v85_v3 = vadd.f32 %v1042_v1, %v1040_v0  ;;  %v1048_v4 = vld [vmem:[#allocation2 + $0x8] sm:$0xff]  ;;  %v1050_v5 = vld [vmem:[#allocation2 + $0x90] sm:$0xff]  ;;  %v149_v27 = vmax.f32 %v1040_v0, %v1042_v1  ;;  %vm207_vm2 = vcmask 195712   ;;  %vm214_vm3 = vcmask 261312  }
  0x10   :  { %v1052_v6 = vld [vmem:[#allocation2 + $0x98] sm:$0xff]  ;;  %v61_v7 = vadd.f32 %v1048_v4, %v1044_v2  ;;  %v1056_v8 = vld [vmem:[#allocation2 + $0x10] sm:$0xff]  ;;  %v1064_v12 = vld [vmem:[#allocation2 + $0xa0] sm:$0xff]  ;;  %v125_v25 = vmax.f32 %v1044_v2, %v1048_v4  ;;  %vm221_vm4 = vcmask 326912   ;;  %vm228_vm5 = vcmask 392512  }
  0x11   :  { %1388 = vst [vmem:[#allocation8_spill] sm:$0xff] %v1052_v6  ;;  %v1058_v9 = vld [vmem:[#allocation2 + $0x18] sm:$0xff]  ;;  %86 = vadd.xlane.f32.xlu1 %v85_v3  ;;  %v88_v10 = vadd.f32 %v1052_v6, %v1050_v5  ;;  %1389 = vst [vmem:[#allocation9_spill] sm:$0xff] %v1064_v12  ;;  %v1066_v13 = vld [vmem:[#allocation2 + $0xa8] sm:$0xff]  ;;  %v152_v26 = vmax.f32 %v1050_v5, %v1052_v6  ;;  %v1011_v3 = vmov 0.0   ;;  %vm235_vm6 = vcmask 458112  }
  0x12   :  { %62 = vadd.xlane.f32.xlu0 %v61_v7  ;;  %v64_v11 = vadd.f32 %v1058_v9, %v1056_v8  ;;  %1390 = vst [vmem:[#allocation10_spill] sm:$0xff] %v1066_v13  ;;  %v1068_v14 = vld [vmem:[#allocation2 + $0x20] sm:$0xff]  ;;  %v1070_v15 = vld [vmem:[#allocation2 + $0x28] sm:$0xff]  ;;  %v91_v16 = vadd.f32 %v1066_v13, %v1064_v12  ;;  %v1076_v18 = vld [vmem:[#allocation2 + $0xb0] sm:$0xff]  ;;  %v128_v24 = vmax.f32 %v1056_v8, %v1058_v9  ;;  %vm242_vm7 = vcmask 523712  }
  0x13   :  { %v67_v17 = vadd.f32 %v1070_v15, %v1068_v14  ;;  %1391 = vst [vmem:[#allocation11_spill] sm:$0xff] %v1076_v18  ;;  %v1078_v19 = vld [vmem:[#allocation2 + $0xb8] sm:$0xff]  ;;  %v1080_v20 = vld [vmem:[#allocation2 + $0x30] sm:$0xff]  ;;  %v1096_v28 = vld [vmem:[#allocation2 + $0xc0] sm:$0xff]  ;;  %v155_v34 = vmax.f32 %v1064_v12, %v1066_v13  ;;  %v131_v35 = vmax.f32 %v1068_v14, %v1070_v15  ;;  %811 = vmatprep.subr.mxu0 %v1011_v3  ;;  %vm283_vm8 = vcmask 1041409  }
  0x14   :  { %1392 = vst [vmem:[#allocation12_spill] sm:$0xff] %v1078_v19  ;;  %v1082_v21 = vld [vmem:[#allocation2 + $0x38] sm:$0xff]  ;;  %v94_v22 = vadd.f32 %v1078_v19, %v1076_v18  ;;  %1393 = vst [vmem:[#allocation13_spill] sm:$0xff] %v1096_v28  ;;  %v1098_v29 = vld [vmem:[#allocation2 + $0xc8] sm:$0xff]  ;;  %v158_v42 = vmax.f32 %v1076_v18, %v1078_v19  ;;  %827 = vmatprep.mubr.msk.f32.mxu0 %vm1012_vm0, %v1011_v3  ;;  %vm380_vm9 = vcmask 1043459   ;;  %vm383_vm10 = vcmask 1041408  }
  0x15   :  { %89 = vadd.xlane.f32.xlu1 %v88_v10  ;;  %v70_v23 = vadd.f32 %v1082_v21, %v1080_v20  ;;  %1394 = vst [vmem:[#allocation14_spill] sm:$0xff] %v1098_v29  ;;  %v1100_v30 = vld [vmem:[#allocation2 + $0x40] sm:$0xff]  ;;  %v1102_v31 = vld [vmem:[#allocation2 + $0x48] sm:$0xff]  ;;  %v97_v32 = vadd.f32 %v1098_v29, %v1096_v28  ;;  %v1112_v36 = vld [vmem:[#allocation2 + $0xd0] sm:$0xff]  ;;  %v134_v43 = vmax.f32 %v1080_v20, %v1082_v21  ;;  %vm393_vm11 = vcmask 523264  }
  0x16   :  { %65 = vadd.xlane.f32.xlu0 %v64_v11  ;;  %v73_v33 = vadd.f32 %v1102_v31, %v1100_v30  ;;  %1395 = vst [vmem:[#allocation15_spill] sm:$0xff] %v1112_v36  ;;  %v1114_v37 = vld [vmem:[#allocation2 + $0xd8] sm:$0xff]  ;;  %v1116_v38 = vld [vmem:[#allocation2 + $0x50] sm:$0xff]  ;;  %v1128_v44 = vld [vmem:[#allocation2 + $0xe0] sm:$0xff]  ;;  %v161_v50 = vmax.f32 %v1096_v28, %v1098_v29  ;;  %v137_v51 = vmax.f32 %v1100_v30, %v1102_v31  ;;  %vm480_vm12 = vcmask 25600  }
  0x17   :  { %1396 = vst [vmem:[#allocation16_spill] sm:$0xff] %v1114_v37  ;;  %v1118_v39 = vld [vmem:[#allocation2 + $0x58] sm:$0xff]  ;;  %v100_v40 = vadd.f32 %v1114_v37, %v1112_v36  ;;  %1397 = vst [vmem:[#allocation17_spill] sm:$0xff] %v1128_v44  ;;  %v1130_v45 = vld [vmem:[#allocation2 + $0xe8] sm:$0xff]  ;;  %v164_v58 = vmax.f32 %v1112_v36, %v1114_v37 }
  0x18   :  { %v76_v41 = vadd.f32 %v1118_v39, %v1116_v38  ;;  %1398 = vst [vmem:[#allocation18_spill] sm:$0xff] %v1130_v45  ;;  %v1132_v46 = vld [vmem:[#allocation2 + $0x60] sm:$0xff]  ;;  %v1134_v47 = vld [vmem:[#allocation2 + $0x68] sm:$0xff]  ;;  %v103_v48 = vadd.f32 %v1130_v45, %v1128_v44  ;;  %v1144_v52 = vld [vmem:[#allocation2 + $0xf0] sm:$0xff]  ;;  %v140_v59 = vmax.f32 %v1116_v38, %v1118_v39  ;;  %v167_v60 = vmax.f32 %v1128_v44, %v1130_v45 }
  0x19   :  { %92 = vadd.xlane.f32.xlu1 %v91_v16  ;;  %v79_v49 = vadd.f32 %v1134_v47, %v1132_v46  ;;  %1399 = vst [vmem:[#allocation19_spill] sm:$0xff] %v1144_v52  ;;  %v1146_v53 = vld [vmem:[#allocation2 + $0xf8] sm:$0xff]  ;;  %v1148_v54 = vld [vmem:[#allocation2 + $0x70] sm:$0xff]  ;;  %v143_v61 = vmax.f32 %v1132_v46, %v1134_v47  ;;  %v390_v11 = vld [vmem:[%s1372_s1 + $0x28] sm:$0xff] }
  0x1a   :  { %68 = vadd.xlane.f32.xlu0 %v67_v17  ;;  %1400 = vst [vmem:[#allocation20_spill] sm:$0xff] %v1146_v53  ;;  %v1150_v55 = vld [vmem:[#allocation2 + $0x78] sm:$0xff]  ;;  %v106_v56 = vadd.f32 %v1146_v53, %v1144_v52  ;;  %v170_v62 = vmax.f32 %v1144_v52, %v1146_v53  ;;  %v391_v10 = vld [vmem:[%s1372_s1 + $0x30] sm:$0xff]  ;;  %v389_v16 = vld [vmem:[%s1372_s1 + $0x20] sm:$0xff] }
  0x1b   :  { %v82_v57 = vadd.f32 %v1150_v55, %v1148_v54  ;;  %v146_v63 = vmax.f32 %v1148_v54, %v1150_v55  ;;  %v392_v7 = vld [vmem:[%s1372_s1 + $0x38] sm:$0xff] }
  0x1c   :  { %812 = vmatpush3.msra.mxu0 %v392_v7  ;;  %v388_v17 = vld [vmem:[%s1372_s1 + $0x18] sm:$0xff] }
  0x1d   :  { %95 = vadd.xlane.f32.xlu1 %v94_v22  ;;  %813 = vmatprep.subr.mxu0 %v1011_v3  ;;  %v387_v22 = vld [vmem:[%s1372_s1 + $0x10] sm:$0xff] }
  0x1e   :  { %71 = vadd.xlane.f32.xlu0 %v70_v23  ;;  %814 = vmatpush3.msra.mxu0 %v391_v10  ;;  %v386_v23 = vld [vmem:[%s1372_s1 + $0x8] sm:$0xff] }
  0x1f   :  { %815 = vmatprep.subr.mxu0 %v1011_v3 }
  0x20   :  { %816 = vmatpush3.msra.mxu0 %v390_v11 }
  0x21   :  { %129 = vmax.xlane.f32.xlu1 %v128_v24  ;;  %817 = vmatprep.subr.mxu0 %v1011_v3  ;;  %v385_v24 = vld [vmem:[%s1372_s1] sm:$0xff] }
  0x22   :  { %126 = vmax.xlane.f32.xlu0 %v125_v25  ;;  %818 = vmatpush3.msra.mxu0 %v389_v16 }
  0x23   :  { %819 = vmatprep.subr.mxu0 %v1011_v3 }
  0x24   :  { %820 = vmatpush3.msra.mxu0 %v388_v17 }
  0x25   :  { %153 = vmax.xlane.f32.xlu1 %v152_v26  ;;  %821 = vmatprep.subr.mxu0 %v1011_v3 }
  0x26   :  { %150 = vmax.xlane.f32.xlu0 %v149_v27  ;;  %822 = vmatpush3.msra.mxu0 %v387_v22 }
  0x27   :  { %823 = vmatprep.subr.mxu0 %v1011_v3 }
  0x28   :  { %824 = vmatpush3.msra.mxu0 %v386_v23 }
  0x29   :  { %98 = vadd.xlane.f32.xlu1 %v97_v32  ;;  %825 = vmatprep.subr.mxu0 %v1011_v3 }
  0x2a   :  { %74 = vadd.xlane.f32.xlu0 %v73_v33  ;;  %826 = vmatpush3.msra.mxu0 %v385_v24 }
  0x2d   :  { %156 = vmax.xlane.f32.xlu1 %v155_v34 }
  0x2e   :  { %132 = vmax.xlane.f32.xlu0 %v131_v35 }
  0x31   :  { %101 = vadd.xlane.f32.xlu1 %v100_v40 }
  0x32   :  { %77 = vadd.xlane.f32.xlu0 %v76_v41 }
  0x35   :  { %159 = vmax.xlane.f32.xlu1 %v158_v42 }
  0x36   :  { %135 = vmax.xlane.f32.xlu0 %v134_v43 }
  0x39   :  { %104 = vadd.xlane.f32.xlu1 %v103_v48 }
  0x3a   :  { %80 = vadd.xlane.f32.xlu0 %v79_v49 }
  0x3d   :  { %162 = vmax.xlane.f32.xlu1 %v161_v50 }
  0x3e   :  { %138 = vmax.xlane.f32.xlu0 %v137_v51 }
  0x41   :  { %107 = vadd.xlane.f32.xlu1 %v106_v56 }
  0x42   :  { %83 = vadd.xlane.f32.xlu0 %v82_v57  ;;  %v189_v57 = vlaneseq }
  0x45   :  { %165 = vmax.xlane.f32.xlu1 %v164_v58 }
  0x46   :  { %141 = vmax.xlane.f32.xlu0 %v140_v59 }
  0x49   :  { %168 = vmax.xlane.f32.xlu1 %v167_v60  ;;  %v190_v60 = vand.u32 127, %v189_v57 }
  0x4a   :  { %144 = vmax.xlane.f32.xlu0 %v143_v61  ;;  %v1204_v61 = vshrl.u32 %v189_v57, 7 }
  0x4b   :  { %v202_v3 = vadd.s32 4294967280, %v190_v60  ;;  %v209_v10 = vadd.s32 4294967272, %v190_v60  ;;  %v216_v53 = vadd.s32 4294967264, %v190_v60  ;;  %v223_v52 = vadd.s32 4294967256, %v190_v60 }
  0x4c   :  { %v1211_v11 = vsub.s32 %v190_v60, %v1204_v61  ;;  %v230_v36 = vadd.s32 4294967248, %v190_v60 }
  0x4d   :  { %171 = vmax.xlane.f32.xlu1 %v170_v62  ;;  %v1217_v23 = vsub.s32 %v202_v3, %v1204_v61  ;;  %v1220_v37 = vsub.s32 %v209_v10, %v1204_v61 }
  0x4e   :  { %147 = vmax.xlane.f32.xlu0 %v146_v63  ;;  %v195_v63 = vadd.s32 4294967288, %v190_v60 }
  0x50   :  { %v1214_v17 = vsub.s32 %v195_v63, %v1204_v61 }
  0x9a   :  { %v87_v25 = vpop.xlane.xlu1 %86 }
  0x9b   :  { %v63_v26 = vpop.xlane.xlu0 %62  ;;  %v117_v45 = vmul.f32 0.00390625, %v87_v25 }
  0x9c   :  { %v109_v29 = vmul.f32 0.00390625, %v63_v26  ;;  %v1232_v26 = vsub.s32 %v223_v52, %v1204_v61 }
  0x9e   :  { %v90_v27 = vpop.xlane.xlu1 %89 }
  0x9f   :  { %v66_v32 = vpop.xlane.xlu0 %65  ;;  %v118_v22 = vmul.f32 0.00390625, %v90_v27  ;;  %v237_v27 = vadd.s32 4294967240, %v190_v60 }
  0xa0   :  { %v110_v57 = vmul.f32 0.00390625, %v66_v32 }
  0xa1   :  { %v251_v3 = vrot.slane %v118_v22, %v1214_v17  ;;  %v1237_v22 = vsub.s32 %v230_v36, %v1204_v61 }
  0xa2   :  { %v93_v33 = vpop.xlane.xlu1 %92  ;;  %v199_v25 = vrot.slane %v110_v57, %v1214_v17 }
  0xa3   :  { %v69_v34 = vpop.xlane.xlu0 %68  ;;  %v119_v44 = vmul.f32 0.00390625, %v93_v33  ;;  %v1229_v33 = vsub.s32 %v216_v53, %v1204_v61  ;;  %v1243_v53 = vsub.s32 %v237_v27, %v1204_v61 }
  0xa4   :  { %v111_v28 = vmul.f32 0.00390625, %v69_v34  ;;  %v247_v34 = vrot.slane %v117_v45, %v1211_v11 }
  0xa6   :  { %v96_v35 = vpop.xlane.xlu1 %95  ;;  %v206_v13 = vrot.slane %v111_v28, %v1217_v23 }
  0xa7   :  { %v72_v40 = vpop.xlane.xlu0 %71  ;;  %v120_v63 = vmul.f32 0.00390625, %v96_v35  ;;  %v256_v35 = vrot.slane %v119_v44, %v1217_v23 }
  0xa8   :  { %v112_v18 = vmul.f32 0.00390625, %v72_v40  ;;  %v194_v40 = vrot.slane %v109_v29, %v1211_v11 }
  0xa9   :  { %v261_v57 = vrot.slane %v120_v63, %v1220_v37 }
  0xaa   :  { %v1192_v41 = vpop.xlane.xlu1 %129  ;;  %v213_v45 = vrot.slane %v112_v18, %v1220_v37  ;;  %v201_v28 = vsel %vm200_vm1, %v199_v25, %v194_v40 }
  0xab   :  { %v1194_v42 = vpop.xlane.xlu0 %126  ;;  %v309_v44 = vrot.slane %v1192_v41, %v1214_v17 }
  0xac   :  { %v305_v36 = vrot.slane %v1194_v42, %v1211_v11  ;;  %v208_v42 = vsel %vm207_vm2, %v206_v13, %v201_v28 }
  0xae   :  { %v1196_v43 = vpop.xlane.xlu1 %153 }
  0xaf   :  { %v1198_v48 = vpop.xlane.xlu0 %150 }
  0xb0   :  { %v344_v63 = vrot.slane %v1198_v48, %v1211_v11  ;;  %v310_v48 = vsel %vm200_vm1, %v309_v44, %v305_v36 }
  0xb2   :  { %v99_v49 = vpop.xlane.xlu1 %98 }
  0xb3   :  { %v75_v50 = vpop.xlane.xlu0 %74  ;;  %v121_v10 = vmul.f32 0.00390625, %v99_v49  ;;  %v252_v49 = vsel %vm200_vm1, %v251_v3, %v247_v34 }
  0xb4   :  { %v113_v60 = vmul.f32 0.00390625, %v75_v50  ;;  %v348_v50 = vrot.slane %v1196_v43, %v1214_v17  ;;  %v257_v18 = vsel %vm207_vm2, %v256_v35, %v252_v49  ;;  %v215_v43 = vsel %vm214_vm3, %v213_v45, %v208_v42 }
  0xb5   :  { %v266_v27 = vrot.slane %v121_v10, %v1229_v33  ;;  %v262_v12 = vsel %vm214_vm3, %v261_v57, %v257_v18 }
  0xb6   :  { %v1200_v51 = vpop.xlane.xlu1 %156  ;;  %v220_v41 = vrot.slane %v113_v60, %v1229_v33  ;;  %v349_v35 = vsel %vm200_vm1, %v348_v50, %v344_v63 }
  0xb7   :  { %v1202_v56 = vpop.xlane.xlu0 %132  ;;  %v353_v11 = vrot.slane %v1200_v51, %v1217_v23 }
  0xb8   :  { %v314_v13 = vrot.slane %v1202_v56, %v1217_v23 }
  0xb9   :  { %v354_v49 = vsel %vm207_vm2, %v353_v11, %v349_v35 }
  0xba   :  { %v102_v58 = vpop.xlane.xlu1 %101 }
  0xbb   :  { %v78_v59 = vpop.xlane.xlu0 %77  ;;  %v122_v3 = vmul.f32 0.00390625, %v102_v58  ;;  %v267_v58 = vsel %vm221_vm4, %v266_v27, %v262_v12 }
  0xbc   :  { %v114_v34 = vmul.f32 0.00390625, %v78_v59 }
  0xbe   :  { %v1206_v62 = vpop.xlane.xlu1 %159  ;;  %v227_v60 = vrot.slane %v114_v34, %v1232_v26 }
  0xbf   :  { %v1208_v7 = vpop.xlane.xlu0 %135  ;;  %v358_v51 = vrot.slane %v1206_v62, %v1220_v37 }
  0xc0   :  { %v319_v57 = vrot.slane %v1208_v7, %v1220_v37  ;;  %v315_v37 = vsel %vm207_vm2, %v314_v13, %v310_v48 }
  0xc1   :  { %v359_v63 = vsel %vm214_vm3, %v358_v51, %v354_v49 }
  0xc2   :  { %v105_v16 = vpop.xlane.xlu1 %104 }
  0xc3   :  { %v81_v24 = vpop.xlane.xlu0 %80  ;;  %v123_v25 = vmul.f32 0.00390625, %v105_v16  ;;  %v222_v16 = vsel %vm221_vm4, %v220_v41, %v215_v43 }
  0xc4   :  { %v115_v40 = vmul.f32 0.00390625, %v81_v24  ;;  %v271_v24 = vrot.slane %v122_v3, %v1232_v26  ;;  %v229_v50 = vsel %vm228_vm5, %v227_v60, %v222_v16 }
  0xc5   :  { %v276_v12 = vrot.slane %v123_v25, %v1237_v22 }
  0xc6   :  { %v1222_v19 = vpop.xlane.xlu1 %162 }
  0xc7   :  { %v1225_v32 = vpop.xlane.xlu0 %138  ;;  %v363_v56 = vrot.slane %v1222_v19, %v1229_v33  ;;  %v272_v19 = vsel %vm228_vm5, %v271_v24, %v267_v58 }
  0xc8   :  { %v324_v45 = vrot.slane %v1225_v32, %v1229_v33  ;;  %v320_v33 = vsel %vm214_vm3, %v319_v57, %v315_v37 }
  0xc9   :  { %v364_v18 = vsel %vm221_vm4, %v363_v56, %v359_v63 }
  0xca   :  { %v108_v52 = vpop.xlane.xlu1 %107 }
  0xcb   :  { %v84_v29 = vpop.xlane.xlu0 %83  ;;  %v124_v17 = vmul.f32 0.00390625, %v108_v52  ;;  %v234_v52 = vrot.slane %v115_v40, %v1237_v22 }
  0xcc   :  { %v116_v59 = vmul.f32 0.00390625, %v84_v29 }
  0xcd   :  { %v281_v44 = vrot.slane %v124_v17, %v1243_v53  ;;  %v236_v27 = vsel %vm235_vm6, %v234_v52, %v229_v50  ;;  %v487_v52 = vsub.s32 0, %v1204_v61 }
  0xce   :  { %v166_v6 = vpop.xlane.xlu1 %165  ;;  %v241_v7 = vrot.slane %v116_v59, %v1243_v53 }
  0xcf   :  { %v142_v10 = vpop.xlane.xlu0 %141  ;;  %v368_v62 = vrot.slane %v166_v6, %v1232_v26  ;;  %v277_v6 = vsel %vm235_vm6, %v276_v12, %v272_v19 }
  0xd0   :  { %v329_v29 = vrot.slane %v142_v10, %v1232_v26  ;;  %v325_v26 = vsel %vm221_vm4, %v324_v45, %v320_v33  ;;  %v282_v3 = vsel %vm242_vm7, %v281_v44, %v277_v6 }
  0xd1   :  { %v369_v34 = vsel %vm228_vm5, %v368_v62, %v364_v18 }
  0xd2   :  { %v169_v23 = vpop.xlane.xlu1 %168  ;;  %v330_v40 = vsel %vm228_vm5, %v329_v29, %v325_v26 }
  0xd3   :  { %v145_v36 = vpop.xlane.xlu0 %144  ;;  %v373_v28 = vrot.slane %v169_v23, %v1237_v22 }
  0xd4   :  { %v334_v32 = vrot.slane %v145_v36, %v1237_v22  ;;  %v243_v22 = vsel %vm242_vm7, %v241_v7, %v236_v27 }
  0xd5   :  { %v374_v43 = vsel %vm235_vm6, %v373_v28, %v369_v34  ;;  %v284_v35 = vsel %vm283_vm8, %v282_v3, %v243_v22  ;;  %v1401_v34 = vld [vmem:[#allocation8_spill] sm:$0xff] }
  0xd6   :  { %v172_v41 = vpop.xlane.xlu1 %171  ;;  %v335_v11 = vsel %vm235_vm6, %v334_v32, %v330_v40 }
  0xd7   :  { %v378_v42 = vrot.slane %v172_v41, %v1243_v53  ;;  %v148_v25 = vpop.xlane.xlu0 %147 }
  0xd8   :  { %v339_v48 = vrot.slane %v148_v25, %v1243_v53  ;;  %v769_v53 = vld [vmem:[%s1373_s2] ss:$0 sm:$0xff]  ;;  %v1402_v25 = vld [vmem:[#allocation9_spill] sm:$0xff]  ;;  %s1013_s2 = smov [#allocation5]  }
  0xd9   :  { %v379_v17 = vsel %vm242_vm7, %v378_v42, %v374_v43  ;;  %v1403_v43 = vld [vmem:[#allocation10_spill] sm:$0xff]  ;;  %s756_s8 = sshll.u32 %s1013_s2, 4  ;;  %s757_s8 = int_to_ptr.vmem [resolvable:$true] %s756_s8 }
  0xda   :  { %v340_v10 = vsel %vm242_vm7, %v339_v48, %v335_v11  ;;  %s984_s9 = scalar_lea.vmem %s757_s8, 4096  ;;  %p989_p6 = scmp.lt.s32.totalorder %s757_s8, %s757_s8 }
  0xdb   :  { %v381_v58 = vsel %vm380_vm9, %v379_v17, %v340_v10  ;;  %p985_p5 = scmp.ne.s32.totalorder %s757_s8, %s984_s9  ;;  %p990_p7 = scmp.lt.s32.totalorder %s984_s9, %s984_s9 }
  0xdc   :  { %v384_v13 = vsel %vm383_vm10, %v284_v35, %v381_v58  ;;  %v1405_v58 = vld [vmem:[#allocation12_spill] sm:$0xff] }
  0xdd   :  { %828 = vmatmul.mubr.msk.f32.vlgmr.msra.gmra.mxu0 %vm393_vm11, %v384_v13  ;;  %p991_p8 = por %p990_p7, %p989_p6 }
  0xdf   :  { %p992_p9 = pnand %p991_p8, %p985_p5 }
 0x19d   :  { %v463_v59 = vpop.f32.mrf.mxu0 }
 0x19e   :  { %v467_v16 = vmax.f32 %v463_v59, 0.0 }
 0x19f   :  { %v829_v24 = vpop.f32.mrf.mxu0 }
 0x1a0   :  { %v469_v60 = vrot.slane %v467_v16, 2  ;;  %v1406_v24 = vld [vmem:[#allocation13_spill] sm:$0xff] }
 0x1a2   :  { %v471_v51 = vadd.f32 %v469_v60, %v467_v16 }
 0x1a4   :  { %v479_v57 = vmul.f32 %v769_v53, %v471_v51 }
 0x1a6   :  { %v481_v12 = vsel %vm480_vm12, %v479_v57, 0.0  ;;  %v1407_v57 = vld [vmem:[#allocation14_spill] sm:$0xff] }
 0x1a7   :  { %482 = vadd.xlane.f32.xlu0 %v481_v12 }
 0x230   :  { %v483_v56 = vpop.xlane.xlu0 %482 }
 0x231   :  { %v488_v23 = vrot.slane %v483_v56, %v487_v52 }
 0x233   :  { %v495_v49 = vmul.f32 %v488_v23, %v1044_v2  ;;  %v496_v45 = vmul.f32 %v488_v23, %v1048_v4  ;;  %v497_v44 = vmul.f32 %v488_v23, %v1056_v8  ;;  %v498_v62 = vmul.f32 %v488_v23, %v1058_v9 }
 0x234   :  { %v499_v36 = vmul.f32 %v488_v23, %v1068_v14  ;;  %v500_v37 = vmul.f32 %v488_v23, %v1070_v15  ;;  %v501_v7 = vmul.f32 %v488_v23, %v1080_v20  ;;  %v502_v50 = vmul.f32 %v488_v23, %v1082_v21 }
 0x235   :  { %v770_v29 = vmul.f32 -1.442695, %v495_v49  ;;  %v771_v28 = vmul.f32 -1.442695, %v496_v45  ;;  %v772_v19 = vmul.f32 -1.442695, %v497_v44  ;;  %v503_v4 = vmul.f32 %v488_v23, %v1100_v30 }
 0x236   :  { %v773_v63 = vmul.f32 -1.442695, %v498_v62  ;;  %v491_v2 = vsub.s32 1, %v1204_v61  ;;  %v774_v8 = vmul.f32 -1.442695, %v499_v36  ;;  %v504_v9 = vmul.f32 %v488_v23, %v1102_v31  ;;  %v1409_v62 = vld [vmem:[#allocation16_spill] sm:$0xff] }
 0x237   :  { %836 = vpow2.f32 %v770_v29  ;;  %v775_v14 = vmul.f32 -1.442695, %v500_v37  ;;  %v505_v15 = vmul.f32 %v488_v23, %v1116_v38  ;;  %v776_v20 = vmul.f32 -1.442695, %v501_v7  ;;  %v1410_v29 = vld [vmem:[#allocation17_spill] sm:$0xff] }
 0x238   :  { %838 = vpow2.f32 %v771_v28  ;;  %v506_v32 = vmul.f32 %v488_v23, %v1118_v39  ;;  %v777_v33 = vmul.f32 -1.442695, %v502_v50  ;;  %v1327_v21 = vrot.slane %v483_v56, %v491_v2 }
 0x239   :  { %840 = vpow2.f32 %v772_v19  ;;  %v507_v61 = vmul.f32 %v488_v23, %v1132_v46  ;;  %v778_v30 = vmul.f32 -1.442695, %v503_v4  ;;  %v508_v6 = vmul.f32 %v488_v23, %v1134_v47 }
 0x23a   :  { %842 = vpow2.f32 %v773_v63  ;;  %v779_v31 = vmul.f32 -1.442695, %v504_v9  ;;  %v509_v27 = vmul.f32 %v488_v23, %v1148_v54  ;;  %v780_v38 = vmul.f32 -1.442695, %v505_v15  ;;  %v1411_v63 = vld [vmem:[#allocation18_spill] sm:$0xff]  ;;  %v1412_v9 = vld [vmem:[#allocation19_spill] sm:$0xff] }
 0x23b   :  { %844 = vpow2.f32 %v774_v8  ;;  %v510_v18 = vmul.f32 %v488_v23, %v1150_v55  ;;  %v781_v39 = vmul.f32 -1.442695, %v506_v32  ;;  %v511_v41 = vmul.f32 %v1327_v21, %v1040_v0  ;;  %v1408_v23 = vld [vmem:[#allocation15_spill] sm:$0xff]  ;;  %v1413_v32 = vld [vmem:[#allocation20_spill] sm:$0xff] }
 0x23c   :  { %846 = vpow2.f32 %v775_v14  ;;  %v782_v26 = vmul.f32 -1.442695, %v507_v61  ;;  %v512_v46 = vmul.f32 %v1327_v21, %v1042_v1  ;;  %v783_v47 = vmul.f32 -1.442695, %v508_v6 }
 0x23d   :  { %848 = vpow2.f32 %v776_v20  ;;  %v513_v3 = vmul.f32 %v1327_v21, %v1050_v5  ;;  %v784_v54 = vmul.f32 -1.442695, %v509_v27  ;;  %v514_v55 = vmul.f32 %v1327_v21, %v1401_v34  ;;  %v1404_v5 = vld [vmem:[#allocation11_spill] sm:$0xff] }
 0x23e   :  { %850 = vpow2.f32 %v777_v33  ;;  %v785_v42 = vmul.f32 -1.442695, %v510_v18  ;;  %v515_v0 = vmul.f32 %v1327_v21, %v1402_v25  ;;  %v786_v22 = vmul.f32 -1.442695, %v511_v41 }
 0x23f   :  { %852 = vpow2.f32 %v778_v30  ;;  %v516_v1 = vmul.f32 %v1327_v21, %v1403_v43  ;;  %v787_v48 = vmul.f32 -1.442695, %v512_v46  ;;  %v517_v17 = vmul.f32 %v1327_v21, %v1404_v5 }
 0x240   :  { %854 = vpow2.f32 %v779_v31  ;;  %v788_v10 = vmul.f32 -1.442695, %v513_v3  ;;  %v518_v13 = vmul.f32 %v1327_v21, %v1405_v58  ;;  %v789_v59 = vmul.f32 -1.442695, %v514_v55 }
 0x241   :  { %856 = vpow2.f32 %v780_v38  ;;  %v519_v60 = vmul.f32 %v1327_v21, %v1406_v24  ;;  %v790_v53 = vmul.f32 -1.442695, %v515_v0  ;;  %v520_v12 = vmul.f32 %v1327_v21, %v1407_v57 }
 0x242   :  { %858 = vpow2.f32 %v781_v39  ;;  %v791_v52 = vmul.f32 -1.442695, %v516_v1  ;;  %v521_v49 = vmul.f32 %v1327_v21, %v1408_v23  ;;  %v792_v45 = vmul.f32 -1.442695, %v517_v17 }
 0x243   :  { %860 = vpow2.f32 %v782_v26  ;;  %v522_v36 = vmul.f32 %v1327_v21, %v1409_v62  ;;  %v793_v37 = vmul.f32 -1.442695, %v518_v13  ;;  %v523_v28 = vmul.f32 %v1327_v21, %v1410_v29 }
 0x244   :  { %v837_v40 = vpop.eup %836  ;;  %862 = vpow2.f32 %v783_v47  ;;  %v794_v19 = vmul.f32 -1.442695, %v519_v60  ;;  %v524_v2 = vmul.f32 %v1327_v21, %v1411_v63  ;;  %v795_v4 = vmul.f32 -1.442695, %v520_v12 }
 0x245   :  { %v839_v11 = vpop.eup %838  ;;  %864 = vpow2.f32 %v784_v54  ;;  %v525_v14 = vmul.f32 %v1327_v21, %v1412_v9  ;;  %v796_v15 = vmul.f32 -1.442695, %v521_v49  ;;  %v526_v33 = vmul.f32 %v1327_v21, %v1413_v32 }
 0x246   :  { %v841_v35 = vpop.eup %840  ;;  %866 = vpow2.f32 %v785_v42  ;;  %v797_v61 = vmul.f32 -1.442695, %v522_v36  ;;  %v798_v6 = vmul.f32 -1.442695, %v523_v28  ;;  %v799_v27 = vmul.f32 -1.442695, %v524_v2 }
 0x247   :  { %v843_v16 = vpop.eup %842  ;;  %868 = vpow2.f32 %v786_v22  ;;  %v800_v18 = vmul.f32 -1.442695, %v525_v14  ;;  %v801_v41 = vmul.f32 -1.442695, %v526_v33  ;;  %v623_v46 = vadd.f32 1.0, %v837_v40 }
 0x248   :  { %v845_v51 = vpop.eup %844  ;;  %870 = vpow2.f32 %v787_v48  ;;  %v624_v21 = vadd.f32 1.0, %v839_v11  ;;  %v625_v54 = vadd.f32 1.0, %v841_v35  ;;  %v626_v55 = vadd.f32 1.0, %v843_v16 }
 0x249   :  { %v847_v56 = vpop.eup %846  ;;  %872 = vpow2.f32 %v788_v10  ;;  %v627_v25 = vadd.f32 1.0, %v845_v51 }
 0x24a   :  { %v849_v44 = vpop.eup %848  ;;  %874 = vpow2.f32 %v789_v59  ;;  %v628_v22 = vadd.f32 1.0, %v847_v56 }
 0x24b   :  { %v851_v7 = vpop.eup %850  ;;  %876 = vpow2.f32 %v790_v53  ;;  %v629_v1 = vadd.f32 1.0, %v849_v44 }
 0x24c   :  { %v853_v50 = vpop.eup %852  ;;  %878 = vpow2.f32 %v791_v52  ;;  %v630_v40 = vadd.f32 1.0, %v851_v7 }
 0x24d   :  { %v855_v8 = vpop.eup %854  ;;  %880 = vpow2.f32 %v792_v45  ;;  %v631_v11 = vadd.f32 1.0, %v853_v50 }
 0x24e   :  { %v857_v20 = vpop.eup %856  ;;  %882 = vpow2.f32 %v793_v37  ;;  %v632_v10 = vadd.f32 1.0, %v855_v8 }
 0x24f   :  { %v859_v30 = vpop.eup %858  ;;  %884 = vpow2.f32 %v794_v19  ;;  %v633_v58 = vadd.f32 1.0, %v857_v20 }
 0x250   :  { %v861_v31 = vpop.eup %860  ;;  %886 = vpow2.f32 %v795_v4  ;;  %v634_v59 = vadd.f32 1.0, %v859_v30 }
 0x251   :  { %v863_v38 = vpop.eup %862  ;;  %888 = vpow2.f32 %v796_v15  ;;  %v635_v24 = vadd.f32 1.0, %v861_v31 }
 0x252   :  { %v865_v39 = vpop.eup %864  ;;  %890 = vpow2.f32 %v797_v61  ;;  %v636_v53 = vadd.f32 1.0, %v863_v38 }
 0x253   :  { %v867_v26 = vpop.eup %866  ;;  %892 = vpow2.f32 %v798_v6  ;;  %v637_v57 = vadd.f32 1.0, %v865_v39 }
 0x254   :  { %v869_v47 = vpop.eup %868  ;;  %894 = vpow2.f32 %v799_v27  ;;  %v638_v52 = vadd.f32 1.0, %v867_v26 }
 0x255   :  { %v871_v3 = vpop.eup %870  ;;  %896 = vpow2.f32 %v800_v18  ;;  %v639_v23 = vadd.f32 1.0, %v869_v47 }
 0x256   :  { %v873_v34 = vpop.eup %872  ;;  %898 = vpow2.f32 %v801_v41  ;;  %v640_v45 = vadd.f32 1.0, %v871_v3 }
 0x257   :  { %v875_v42 = vpop.eup %874  ;;  %900 = vrcp.f32 %v623_v46  ;;  %v641_v62 = vadd.f32 1.0, %v873_v34 }
 0x258   :  { %v877_v0 = vpop.eup %876  ;;  %902 = vrcp.f32 %v624_v21  ;;  %v642_v37 = vadd.f32 1.0, %v875_v42 }
 0x259   :  { %v879_v43 = vpop.eup %878  ;;  %904 = vrcp.f32 %v625_v54  ;;  %v643_v29 = vadd.f32 1.0, %v877_v0 }
 0x25a   :  { %v881_v48 = vpop.eup %880  ;;  %906 = vrcp.f32 %v626_v55  ;;  %v644_v19 = vadd.f32 1.0, %v879_v43 }
 0x25b   :  { %v883_v5 = vpop.eup %882  ;;  %908 = vrcp.f32 %v627_v25  ;;  %v645_v63 = vadd.f32 1.0, %v881_v48 }
 0x25c   :  { %v885_v17 = vpop.eup %884  ;;  %910 = vrcp.f32 %v628_v22  ;;  %v646_v4 = vadd.f32 1.0, %v883_v5 }
 0x25d   :  { %v887_v35 = vpop.eup %886  ;;  %912 = vrcp.f32 %v629_v1  ;;  %v647_v9 = vadd.f32 1.0, %v885_v17 }
 0x25e   :  { %v889_v13 = vpop.eup %888  ;;  %914 = vrcp.f32 %v630_v40  ;;  %v648_v15 = vadd.f32 1.0, %v887_v35 }
 0x25f   :  { %v891_v16 = vpop.eup %890  ;;  %916 = vrcp.f32 %v631_v11  ;;  %v649_v32 = vadd.f32 1.0, %v889_v13 }
 0x260   :  { %v893_v60 = vpop.eup %892  ;;  %918 = vrcp.f32 %v632_v10  ;;  %v650_v61 = vadd.f32 1.0, %v891_v16 }
 0x261   :  { %v895_v51 = vpop.eup %894  ;;  %920 = vrcp.f32 %v633_v58  ;;  %v651_v6 = vadd.f32 1.0, %v893_v60 }
 0x262   :  { %v897_v12 = vpop.eup %896  ;;  %922 = vrcp.f32 %v634_v59  ;;  %v652_v27 = vadd.f32 1.0, %v895_v51 }
 0x263   :  { %v899_v56 = vpop.eup %898  ;;  %924 = vrcp.f32 %v635_v24  ;;  %v653_v18 = vadd.f32 1.0, %v897_v12 }
 0x264   :  { %v901_v49 = vpop.eup %900  ;;  %926 = vrcp.f32 %v636_v53  ;;  %v654_v41 = vadd.f32 1.0, %v899_v56 }
 0x265   :  { %v903_v44 = vpop.eup %902  ;;  %928 = vrcp.f32 %v637_v57  ;;  %719 = vst [vmem:[#allocation5] sm:$0xff] %v901_v49 }
 0x266   :  { %v905_v36 = vpop.eup %904  ;;  %930 = vrcp.f32 %v638_v52  ;;  %720 = vst [vmem:[#allocation5 + $0x8] sm:$0xff] %v903_v44 }
 0x267   :  { %v907_v7 = vpop.eup %906  ;;  %932 = vrcp.f32 %v639_v23  ;;  %721 = vst [vmem:[#allocation5 + $0x10] sm:$0xff] %v905_v36 }
 0x268   :  { %v909_v28 = vpop.eup %908  ;;  %934 = vrcp.f32 %v640_v45  ;;  %722 = vst [vmem:[#allocation5 + $0x18] sm:$0xff] %v907_v7 }
 0x269   :  { %v911_v50 = vpop.eup %910  ;;  %936 = vrcp.f32 %v641_v62  ;;  %723 = vst [vmem:[#allocation5 + $0x20] sm:$0xff] %v909_v28 }
 0x26a   :  { %v913_v2 = vpop.eup %912  ;;  %938 = vrcp.f32 %v642_v37  ;;  %724 = vst [vmem:[#allocation5 + $0x28] sm:$0xff] %v911_v50 }
 0x26b   :  { %v915_v8 = vpop.eup %914  ;;  %940 = vrcp.f32 %v643_v29  ;;  %725 = vst [vmem:[#allocation5 + $0x30] sm:$0xff] %v913_v2 }
 0x26c   :  { %v917_v14 = vpop.eup %916  ;;  %942 = vrcp.f32 %v644_v19  ;;  %726 = vst [vmem:[#allocation5 + $0x38] sm:$0xff] %v915_v8 }
 0x26d   :  { %v919_v20 = vpop.eup %918  ;;  %944 = vrcp.f32 %v645_v63  ;;  %727 = vst [vmem:[#allocation5 + $0x40] sm:$0xff] %v917_v14 }
 0x26e   :  { %v921_v33 = vpop.eup %920  ;;  %946 = vrcp.f32 %v646_v4  ;;  %728 = vst [vmem:[#allocation5 + $0x48] sm:$0xff] %v919_v20 }
 0x26f   :  { %v923_v30 = vpop.eup %922  ;;  %948 = vrcp.f32 %v647_v9  ;;  %729 = vst [vmem:[#allocation5 + $0x50] sm:$0xff] %v921_v33 }
 0x270   :  { %v925_v31 = vpop.eup %924  ;;  %950 = vrcp.f32 %v648_v15  ;;  %730 = vst [vmem:[#allocation5 + $0x58] sm:$0xff] %v923_v30 }
 0x271   :  { %v927_v38 = vpop.eup %926  ;;  %952 = vrcp.f32 %v649_v32  ;;  %731 = vst [vmem:[#allocation5 + $0x60] sm:$0xff] %v925_v31 }
 0x272   :  { %v929_v39 = vpop.eup %928  ;;  %954 = vrcp.f32 %v650_v61  ;;  %732 = vst [vmem:[#allocation5 + $0x68] sm:$0xff] %v927_v38 }
 0x273   :  { %v931_v26 = vpop.eup %930  ;;  %956 = vrcp.f32 %v651_v6  ;;  %733 = vst [vmem:[#allocation5 + $0x70] sm:$0xff] %v929_v39 }
 0x274   :  { %v933_v46 = vpop.eup %932  ;;  %958 = vrcp.f32 %v652_v27  ;;  %734 = vst [vmem:[#allocation5 + $0x78] sm:$0xff] %v931_v26 }
 0x275   :  { %v935_v47 = vpop.eup %934  ;;  %960 = vrcp.f32 %v653_v18  ;;  %735 = vst [vmem:[#allocation5 + $0x80] sm:$0xff] %v933_v46 }
 0x276   :  { %v937_v21 = vpop.eup %936  ;;  %962 = vrcp.f32 %v654_v41  ;;  %736 = vst [vmem:[#allocation5 + $0x88] sm:$0xff] %v935_v47 }
 0x277   :  { %v939_v3 = vpop.eup %938  ;;  %737 = vst [vmem:[#allocation5 + $0x90] sm:$0xff] %v937_v21 }
 0x278   :  { %v941_v54 = vpop.eup %940  ;;  %738 = vst [vmem:[#allocation5 + $0x98] sm:$0xff] %v939_v3 }
 0x279   :  { %v943_v34 = vpop.eup %942  ;;  %739 = vst [vmem:[#allocation5 + $0xa0] sm:$0xff] %v941_v54 }
 0x27a   :  { %v945_v55 = vpop.eup %944  ;;  %740 = vst [vmem:[#allocation5 + $0xa8] sm:$0xff] %v943_v34 }
 0x27b   :  { %v947_v42 = vpop.eup %946  ;;  %741 = vst [vmem:[#allocation5 + $0xb0] sm:$0xff] %v945_v55 }
 0x27c   :  { %v949_v25 = vpop.eup %948  ;;  %742 = vst [vmem:[#allocation5 + $0xb8] sm:$0xff] %v947_v42 }
 0x27d   :  { %v951_v0 = vpop.eup %950  ;;  %743 = vst [vmem:[#allocation5 + $0xc0] sm:$0xff] %v949_v25 }
 0x27e   :  { %v953_v22 = vpop.eup %952  ;;  %744 = vst [vmem:[#allocation5 + $0xc8] sm:$0xff] %v951_v0 }
 0x27f   :  { %v955_v43 = vpop.eup %954  ;;  %745 = vst [vmem:[#allocation5 + $0xd0] sm:$0xff] %v953_v22 }
 0x280   :  { %v957_v1 = vpop.eup %956  ;;  %746 = vst [vmem:[#allocation5 + $0xd8] sm:$0xff] %v955_v43 }
 0x281   :  { %v959_v48 = vpop.eup %958  ;;  %747 = vst [vmem:[#allocation5 + $0xe0] sm:$0xff] %v957_v1 }
 0x282   :  { %v961_v40 = vpop.eup %960  ;;  %748 = vst [vmem:[#allocation5 + $0xe8] sm:$0xff] %v959_v48 }
 0x283   :  { %v963_v5 = vpop.eup %962  ;;  %749 = vst [vmem:[#allocation5 + $0xf0] sm:$0xff] %v961_v40 }
 0x284   :  { %750 = vst [vmem:[#allocation5 + $0xf8] sm:$0xff] %v963_v5 }
 0x285   :  { %995 = shalt.err (!%p992_p9)
}
 0x286   :  { %762 = dma.vmem_to_hbm [thread:$0]  %s757_s8, 4096, %s1374_s3, [#allocation4], %s1009_s15, %s1009_s15, %s1010_s16  }
 0x287   :  { %1006 = dma.done.wait [#allocation4], 4096  }
 0x288   :  { %1007 = vsyncadd [#allocation4], 4294963200 }
 0x289   :  { %766 = vsyncpa [#allocation3], 1 }
 0x28a   :  { %767 = vsyncpa [#allocation4], 1 }

</bundles_post_ra>
